<compile_context>
chip_gen: v6e
topology: v6e:2x2x1
jax: 0.10.0
libtpu: 0.0.40
codegen_flags: <defaults>
</compile_context>

<pallas_src>
import math

import jax
import jax.numpy as jnp
from jax.experimental import pallas as pl
from jax.experimental.pallas import tpu as pltpu


def _identity_for_max(dtype):
    """Python-scalar identity element for max (never a jax.Array -> no closure capture)."""
    dtype = jnp.dtype(dtype)
    if jnp.issubdtype(dtype, jnp.floating):
        return float("-inf")
    if dtype == jnp.bool_:
        return False
    return int(jnp.iinfo(dtype).min)


def _round_down(v: int, m: int) -> int:
    return max(m, (v // m) * m)


def _token_max_pool_pallas(x, *, block_n, block_t, block_e, target_block_bytes):
    """(N, T, E) -> (N, E) max over T via a T-tiled resident-accumulator reduction."""
    N, T, E = x.shape
    itemsize = jnp.dtype(x.dtype).itemsize
    # Sublane packing granularity: 8 for 4-byte, 16 for 2-byte, 32 for 1-byte dtypes.
    sub = {1: 32, 2: 16}.get(itemsize, 8)
    row_bytes = T * E * itemsize  # bytes of one (1, T, E) slab

    # ---- Block sizing: prefer block_t == T (contiguous per-row DMA), then widen block_n.
    if block_n is None and block_t is None:
        bn0 = min(N, sub)
        if bn0 * row_bytes <= target_block_bytes or T <= sub:
            block_t = T
            bn_budget = max(bn0, target_block_bytes // max(1, row_bytes))
            block_n = N if bn_budget >= N else _round_down(bn_budget, sub)
        else:
            block_n = bn0
            bt_budget = target_block_bytes // max(1, block_n * E * itemsize)
            block_t = min(T, _round_down(bt_budget, sub))
    elif block_t is None:
        bt_budget = target_block_bytes // max(1, block_n * E * itemsize)
        block_t = T if bt_budget >= T else _round_down(bt_budget, sub)
    elif block_n is None:
        block_n = min(N, sub)
    block_t = min(block_t, T)

    # ---- E split: give v7x's second TensorCore work when there is only one N block.
    if block_e is None:
        if pl.cdiv(N, block_n) < 2 and E >= 256 and E % 256 == 0:
            block_e = E // 2  # multiple of 128 -> exactly two "parallel" E blocks
        else:
            block_e = E
    block_e = min(block_e, E)

    grid = (pl.cdiv(N, block_n), pl.cdiv(E, block_e), pl.cdiv(T, block_t))
    neg = _identity_for_max(x.dtype)        # Python scalar, safe to close over
    rem_t = T % block_t                      # static size of the partial tail T block

    def kernel(x_ref, o_ref):
        ti = pl.program_id(2)

        # Initialize the resident (block_n, block_e) accumulator on the first T step.
        @pl.when(ti == 0)
        def _init():
            o_ref[...] = jnp.full(o_ref.shape, neg, dtype=o_ref.dtype)

        if rem_t == 0:
            # Steady state: one unmasked max per element -- kernel stays purely DMA-bound.
            o_ref[...] = jnp.maximum(o_ref[...], jnp.max(x_ref[...], axis=1))
        else:
            nt = pl.num_programs(2)

            @pl.when(ti < nt - 1)
            def _steady():
                o_ref[...] = jnp.maximum(o_ref[...], jnp.max(x_ref[...], axis=1))

            @pl.when(ti == nt - 1)
            def _tail():
                # Static sub-slice of the tail block: no iota/where on any path.
                o_ref[...] = jnp.maximum(
                    o_ref[...], jnp.max(x_ref[:, :rem_t, :], axis=1)
                )

    cost = pl.CostEstimate(
        flops=N * T * E,
        transcendentals=0,
        bytes_accessed=N * T * E * itemsize + N * E * itemsize,
    )

    return pl.pallas_call(
        kernel,
        out_shape=jax.ShapeDtypeStruct((N, E), x.dtype),
        grid_spec=pltpu.PrefetchScalarGridSpec(
            num_scalar_prefetch=0,
            grid=grid,
            in_specs=[
                pl.BlockSpec((block_n, block_t, block_e), lambda n, e, t: (n, t, e))
            ],
            out_specs=pl.BlockSpec((block_n, block_e), lambda n, e, t: (n, e)),
        ),
        compiler_params=pltpu.CompilerParams(
            dimension_semantics=("parallel", "parallel", "arbitrary"),
        ),
        cost_estimate=cost,
    )(x)


def token_max_pool(
    x: jax.Array,
    *,
    block_n: int | None = None,
    block_t: int | None = None,
    block_e: int | None = None,
    target_block_bytes: int = 6 * 1024 * 1024,
    min_pallas_bytes: int = 256 * 1024,
    force_pallas: bool = False,
) -> jax.Array:
    """Max over the token dimension: (N, T, E) -> (N, E). Matches torch x.max(dim=1).values."""
    N, T, E = x.shape
    itemsize = jnp.dtype(x.dtype).itemsize

    # Tiny-input fast path: pallas_call fixed cost dominates for sub-VMEM inputs.
    if not force_pallas and N * T * E * itemsize < min_pallas_bytes:
        return jnp.max(x, axis=1)

    # Lane-density fix for narrow feature dims (E < 128): fold k tokens into the lane axis
    # so every vreg / VMEM tile / output store is 128-lane dense, then finish with a tiny max.
    if E < 128 and block_n is None and block_t is None and block_e is None and T > 1:
        k = 128 // math.gcd(E, 128)  # smallest k with (k*E) % 128 == 0
        if k > 1 and T % k == 0:
            folded = x.reshape(N, T // k, k * E)  # free: contiguous row-major reshape
            pooled = _token_max_pool_pallas(
                folded,
                block_n=None,
                block_t=None,
                block_e=None,
                target_block_bytes=target_block_bytes,
            )  # (N, k*E)
            return jnp.max(pooled.reshape(N, k, E), axis=1)

    return _token_max_pool_pallas(
        x,
        block_n=block_n,
        block_t=block_t,
        block_e=block_e,
        target_block_bytes=target_block_bytes,
    )


if __name__ == "__main__":
    key = jax.random.PRNGKey(0)
    k1, k2, k3, k4 = jax.random.split(key, 4)

    # 1) The module's forward shape: (N, T, E) = (2, 8, 32), f32.
    #    E=32 < 128 -> lane-fold path ((2,8,32) -> (2,2,128)); force the Pallas kernel.
    x1 = jax.random.normal(k1, (2, 8, 32), dtype=jnp.float32)
    out1 = token_max_pool(x1, force_pallas=True)
    jax.block_until_ready(out1)
    assert out1.shape == (2, 32)
    assert jnp.array_equal(out1, jnp.max(x1, axis=1)), "mismatch (module shape, fold path)"

    # 2) Multi-step T reduction with a partial tail T block and a partial N block.
    x2 = jax.random.normal(k2, (10, 260, 256), dtype=jnp.float32)
    out2 = token_max_pool(x2, block_n=8, block_t=128, force_pallas=True)
    jax.block_until_ready(out2)
    assert out2.shape == (10, 256)
    assert jnp.array_equal(out2, jnp.max(x2, axis=1)), "mismatch (tiled T with tail)"

    # 3) Default auto-sizing with the E-split path (single N block -> two E blocks).
    x3 = jax.random.normal(k3, (4, 64, 512), dtype=jnp.float32)
    out3 = token_max_pool(x3, force_pallas=True)
    jax.block_until_ready(out3)
    assert out3.shape == (4, 512)
    assert jnp.array_equal(out3, jnp.max(x3, axis=1)), "mismatch (E-split path)"

    # 4) bf16 with the lane-fold path and an odd batch size.
    x4 = jax.random.normal(k4, (9, 40, 32), dtype=jnp.bfloat16)
    out4 = token_max_pool(x4, force_pallas=True)
    jax.block_until_ready(out4)
    assert out4.shape == (9, 32)
    assert jnp.array_equal(out4, jnp.max(x4, axis=1)), "mismatch (bf16 fold path)"

    # 5) Tiny-input fast path (no Pallas launch) still matches the module semantics.
    out_fast = token_max_pool(x1)
    assert jnp.array_equal(out_fast, jnp.max(x1, axis=1)), "mismatch (fast path)"

    print("KERNEL_OK")
</pallas_src>

<mosaic_0001>
module attributes {stable_mosaic.version = 11 : i64} {
  func.func @kernel(%arg0: i32, %arg1: i32, %arg2: i32, %arg3: memref<2x2x128xf32, #tpu.memory_space<vmem>>, %arg4: memref<2x128xf32, #tpu.memory_space<vmem>>) attributes {dimension_semantics = [#tpu.dimension_semantics<parallel>, #tpu.dimension_semantics<parallel>, #tpu.dimension_semantics<arbitrary>], iteration_bounds = array<i64: 1, 1, 1>, scalar_prefetch = 0 : i64, scratch_operands = 0 : i64, tpu.core_type = #tpu.core_type<tc>, window_params = [{transform_indices = @transform_0, window_bounds = array<i64: 2, 2, 128>}, {transform_indices = @transform_1, window_bounds = array<i64: 2, 128>}]} {
    %c0_i32 = arith.constant 0 : i32
    %0 = arith.cmpi eq, %arg2, %c0_i32 : i32
    %1 = arith.extui %0 : i1 to i32
    %c0_i32_0 = arith.constant 0 : i32
    %2 = arith.cmpi ne, %1, %c0_i32_0 : i32
    scf.if %2 {
      %cst_7 = arith.constant 0xFF800000 : f32
      %8 = vector.broadcast %cst_7 : f32 to vector<2x128xf32>
      %c0_8 = arith.constant 0 : index
      %c0_9 = arith.constant 0 : index
      %9 = vector.load %arg4[%c0_8, %c0_9] : memref<2x128xf32, #tpu.memory_space<vmem>>, vector<2x128xf32>
      tpu.vector_store %arg4[%c0_8, %c0_9], %8 {strides = array<i32>} : memref<2x128xf32, #tpu.memory_space<vmem>>, vector<2x128xf32>,
    } else {
    }
    %c0 = arith.constant 0 : index
    %c0_1 = arith.constant 0 : index
    %3 = vector.load %arg4[%c0, %c0_1] : memref<2x128xf32, #tpu.memory_space<vmem>>, vector<2x128xf32>
    %c0_2 = arith.constant 0 : index
    %c0_3 = arith.constant 0 : index
    %c0_4 = arith.constant 0 : index
    %4 = vector.load %arg3[%c0_2, %c0_3, %c0_4] : memref<2x2x128xf32, #tpu.memory_space<vmem>>, vector<2x2x128xf32>
    %cst = arith.constant dense<0xFF800000> : vector<2x128xf32>
    %5 = vector.multi_reduction <maximumf>, %4, %cst [1] : vector<2x2x128xf32> to vector<2x128xf32>
    %6 = arith.maximumf %3, %5 : vector<2x128xf32>
    %c0_5 = arith.constant 0 : index
    %c0_6 = arith.constant 0 : index
    %7 = vector.load %arg4[%c0_5, %c0_6] : memref<2x128xf32, #tpu.memory_space<vmem>>, vector<2x128xf32>
    tpu.vector_store %arg4[%c0_5, %c0_6], %6 {strides = array<i32>} : memref<2x128xf32, #tpu.memory_space<vmem>>, vector<2x128xf32>,
    return
  }
  func.func @transform_0(%arg0: i32, %arg1: i32, %arg2: i32) -> (i32, i32, i32) {
    %c0_i32 = arith.constant 0 : i32
    return %arg0, %arg2, %arg1 : i32, i32, i32
  }
  func.func @transform_1(%arg0: i32, %arg1: i32, %arg2: i32) -> (i32, i32) {
    %c0_i32 = arith.constant 0 : i32
    return %arg0, %arg1 : i32, i32
  }
}

</mosaic_0001>

<bundles_post_ra>
// kernel: tpu_custom_call.1
= control target key start
LH: loop header
LB: loop body
LE: loop exit
PB: predicated region body
PF: predicated region fallthrough
CT: control target
= control target key end

     0   :  { %6 = vsyncpa [#allocation3], 0  ;;  %s138_s0 = inlined_call_operand.hbm [shape: f32[2,2,128], index: 0, kind: input, shape index: {}]   ;;  %s139_s1 = inlined_call_operand.hbm [shape: f32[2,128], index: 1, kind: output, shape index: {}]  }
   0x1   :  { %7 = vsyncpa [#allocation4], 0  ;;  %s117_s6 = smov [#allocation2]  }
   0x2   :  { %s13_s7 = sshll.u32 %s117_s6, 4  ;;  %s14_s7 = int_to_ptr.vmem [resolvable:$true] %s13_s7 }
   0x3   :  { %s81_s8 = scalar_lea.vmem %s14_s7, 64  ;;  %p86_p1 = scmp.lt.s32.totalorder %s14_s7, %s14_s7 }
   0x4   :  { %p82_p0 = scmp.ne.s32.totalorder %s14_s7, %s81_s8  ;;  %p87_p2 = scmp.lt.s32.totalorder %s81_s8, %s81_s8 }
   0x6   :  { %p88_p3 = por %p87_p2, %p86_p1 }
   0x8   :  { %p89_p4 = pnand %p88_p3, %p82_p0 }
   0xa   :  { %92 = shalt.err (!%p89_p4)
}
   0xb   :  { %s118_s9 = smov 32   ;;  %s119_s10 = smov 2  }
   0xc   :  { %19 = dma.hbm_to_vmem [thread:$0]  %s138_s0, 64, %s14_s7, [#allocation3], %s118_s9, %s118_s9, %s119_s10  }
   0xd   :  { %113 = dma.done.wait [#allocation3], 64  }
   0xe   :  { %114 = vsyncadd [#allocation3], 4294967232  ;;  %v120_v0 = vmov -inf   ;;  %vm31_vm0 = vcmask 1041408   ;;  %v29_v1 = vld [vmem:[#allocation2] sm:$0x3] }
   0xf   :  { %27 = vst [vmem:[#allocation5] sm:$0x3] %v120_v0  ;;  %v30_v2 = vld [vmem:[#allocation2 + $0x2] sm:$0x3]  ;;  %v32_v3 = vsel %vm31_vm0, %v29_v1, -inf  ;;  %vm48_vm1 = vcmask 1041409  }
  0x10   :  { %v39_v4 = vsel %vm31_vm0, %v30_v2, -inf  ;;  %v33_v5 = vrot.slane %v32_v3, 4  ;;  %s121_s0 = smov [#allocation5]  }
  0x11   :  { %v40_v6 = vrot.slane %v39_v4, 4  ;;  %s59_s13 = sshll.u32 %s121_s0, 4  ;;  %s60_s13 = int_to_ptr.vmem [resolvable:$true] %s59_s13 }
  0x12   :  { %v34_v7 = vmax.f32 %v32_v3, %v33_v5  ;;  %s93_s14 = scalar_lea.vmem %s60_s13, 32  ;;  %p98_p6 = scmp.lt.s32.totalorder %s60_s13, %s60_s13 }
  0x13   :  { %v41_v8 = vmax.f32 %v39_v4, %v40_v6  ;;  %p94_p5 = scmp.ne.s32.totalorder %s60_s13, %s93_s14  ;;  %p99_p7 = scmp.lt.s32.totalorder %s93_s14, %s93_s14 }
  0x14   :  { %v35_v9 = vrot.slane %v34_v7, 2 }
  0x15   :  { %v42_v10 = vrot.slane %v41_v8, 2  ;;  %p100_p8 = por %p99_p7, %p98_p6 }
  0x16   :  { %v36_v11 = vmax.f32 %v34_v7, %v35_v9  ;;  %v28_v15 = vld [vmem:[#allocation5] sm:$0x3] }
  0x17   :  { %v43_v12 = vmax.f32 %v41_v8, %v42_v10  ;;  %p101_p9 = pnand %p100_p8, %p94_p5 }
  0x18   :  { %v37_v13 = vrot.slane %v36_v11, 1 }
  0x19   :  { %v44_v14 = vrot.slane %v43_v12, 1 }
  0x1a   :  { %v38_v16 = vmax.f32 %v36_v11, %v37_v13 }
  0x1b   :  { %v45_v17 = vmax.f32 %v43_v12, %v44_v14 }
  0x1d   :  { %v49_v18 = vsel %vm48_vm1, %v45_v17, %v38_v16 }
  0x1e   :  { %v51_v19 = vmax.f32 %v28_v15, %v49_v18 }
  0x20   :  { %52 = vst [vmem:[#allocation5] sm:$0x3] %v51_v19 }
  0x21   :  { %104 = shalt.err (!%p101_p9)
}
  0x22   :  { %62 = dma.vmem_to_hbm [thread:$0]  %s60_s13, 32, %s139_s1, [#allocation4]  }
  0x23   :  { %115 = dma.done.wait [#allocation4], 32  }
  0x24   :  { %116 = vsyncadd [#allocation4], 4294967264 }
  0x25   :  { %66 = vsyncpa [#allocation3], 1 }
  0x26   :  { %67 = vsyncpa [#allocation4], 1 }

</bundles_post_ra>
